<compile_context>
chip_gen: v5e
topology: v5e:2x2
jax: 0.10.0
libtpu: 0.0.40
codegen_flags: <defaults>
</compile_context>

<pallas_src>
import jax
import jax.numpy as jnp
from jax.experimental import pallas as pl
from jax.experimental.pallas import tpu as pltpu


def _affine_kernel(w_ref, b_ref, x_ref, o_ref):
    # w_ref, b_ref: (1,) scalars in SMEM (scalar path, no vector load).
    # x_ref, o_ref: (r_block, lane) tiles in VMEM.
    # Pure VPU elementwise affine; intentionally NOT a jnp.dot against a 1x1
    # weight (the MXU would only add result-FIFO latency here).
    o_ref[...] = x_ref[...] * w_ref[0] + b_ref[0]


_LANES = (1024, 512, 256, 128)   # candidate lane-dense widths (multiples of 128)
_ROW_TILE = 512                  # 512 x 1024 f32 = 2 MiB/tile


def linear_forward(x, weight, bias):
    """y = x @ weight.T + bias for torch.nn.Linear(1, 1).  x: (..., 1) -> (..., 1)."""
    orig_shape = x.shape
    dtype = x.dtype
    n = x.size

    flat = x.reshape(-1)  # free reshape

    # Prefer a lane width that divides n exactly so no pad/slice copy is needed.
    lane = next((l for l in _LANES if n >= l and n % l == 0), None)
    padded = lane is None
    if padded:
        lane = 1024 if n >= 1024 else 128
        total = pl.cdiv(n, lane) * lane
        flat = jnp.pad(flat, (0, total - n))   # only taken for ragged sizes
    rows = flat.size // lane
    slab = flat.reshape(rows, lane)            # lane-dense view

    # Ragged last row-block is handled by Pallas edge masking; never pad rows.
    r_block = _ROW_TILE if rows >= _ROW_TILE else rows
    grid = (pl.cdiv(rows, r_block),)

    w = weight.reshape(1).astype(dtype)
    b = bias.reshape(1).astype(dtype)

    out = pl.pallas_call(
        _affine_kernel,
        out_shape=jax.ShapeDtypeStruct((rows, lane), dtype),
        grid=grid,
        in_specs=[
            pl.BlockSpec(memory_space=pltpu.MemorySpace.SMEM),   # weight scalar
            pl.BlockSpec(memory_space=pltpu.MemorySpace.SMEM),   # bias scalar
            pl.BlockSpec((r_block, lane), lambda i: (i, 0)),     # x tile
        ],
        out_specs=pl.BlockSpec((r_block, lane), lambda i: (i, 0)),
        compiler_params=pltpu.CompilerParams(
            dimension_semantics=("parallel",)),
    )(w, b, slab)

    flat_out = out.reshape(-1)
    if padded:
        flat_out = flat_out[:n]                # slice pad off (ragged case only)
    return flat_out.reshape(orig_shape)


if __name__ == "__main__":
    key = jax.random.PRNGKey(0)
    kx, kw, kb = jax.random.split(key, 3)

    # Parameters mimicking torch.nn.Linear's U(-1/sqrt(fan_in), 1/sqrt(fan_in))
    # init with fan_in = 1.
    bound = 1.0
    weight = jax.random.uniform(kw, (1, 1), minval=-bound, maxval=bound,
                                dtype=jnp.float32)
    bias = jax.random.uniform(kb, (1,), minval=-bound, maxval=bound,
                              dtype=jnp.float32)

    fwd = jax.jit(linear_forward)

    # 1) Small batch consistent with Linear(1, 1): (batch, 1) -> (batch, 1).
    batch = 8
    x = jax.random.normal(kx, (batch, 1), dtype=jnp.float32)
    y = jax.block_until_ready(fwd(x, weight, bias))
    y_ref = x @ weight.T + bias
    assert y.shape == (batch, 1)
    assert jnp.allclose(y, y_ref, atol=1e-6), "mismatch vs reference (small)"

    # 2) Divisible batch -> zero-copy lane-dense path, grid > 1, ragged row edge.
    b2 = 600 * 1024
    x2 = jax.random.normal(kx, (b2, 1), dtype=jnp.float32)
    y2 = jax.block_until_ready(fwd(x2, weight, bias))
    y2_ref = x2 @ weight.T + bias
    assert y2.shape == (b2, 1)
    assert jnp.allclose(y2, y2_ref, atol=1e-6), "mismatch vs reference (divisible)"

    # 3) Ragged batch -> pad/slice fallback path, grid > 1.
    b3 = 512 * 1024 + 7
    x3 = jax.random.normal(kx, (b3, 1), dtype=jnp.float32)
    y3 = jax.block_until_ready(fwd(x3, weight, bias))
    y3_ref = x3 @ weight.T + bias
    assert y3.shape == (b3, 1)
    assert jnp.allclose(y3, y3_ref, atol=1e-6), "mismatch vs reference (ragged)"

    print("KERNEL_OK")
</pallas_src>

<mosaic_0001>
module attributes {stable_mosaic.version = 11 : i64} {
  func.func @_affine_kernel(%arg0: i32, %arg1: memref<1xf32, #tpu.memory_space<smem>>, %arg2: memref<1xf32, #tpu.memory_space<smem>>, %arg3: memref<1x128xf32, #tpu.memory_space<vmem>>, %arg4: memref<1x128xf32, #tpu.memory_space<vmem>>) attributes {dimension_semantics = [#tpu.dimension_semantics<parallel>], iteration_bounds = array<i64: 1>, scalar_prefetch = 0 : i64, scratch_operands = 0 : i64, tpu.core_type = #tpu.core_type<tc>, window_params = [{transform_indices = @transform_0, window_bounds = array<i64: 1>}, {transform_indices = @transform_1, window_bounds = array<i64: 1>}, {transform_indices = @transform_2, window_bounds = array<i64: 1, 128>}, {transform_indices = @transform_3, window_bounds = array<i64: 1, 128>}]} {
    %c0 = arith.constant 0 : index
    %c0_0 = arith.constant 0 : index
    %0 = vector.load %arg3[%c0, %c0_0] : memref<1x128xf32, #tpu.memory_space<vmem>>, vector<1x128xf32>
    %c0_1 = arith.constant 0 : index
    %1 = memref.load %arg1[%c0_1] : memref<1xf32, #tpu.memory_space<smem>>
    %2 = vector.broadcast %1 : f32 to vector<1x128xf32>
    %3 = arith.mulf %0, %2 : vector<1x128xf32>
    %c0_2 = arith.constant 0 : index
    %4 = memref.load %arg2[%c0_2] : memref<1xf32, #tpu.memory_space<smem>>
    %5 = vector.broadcast %4 : f32 to vector<1x128xf32>
    %6 = arith.addf %3, %5 : vector<1x128xf32>
    %c0_3 = arith.constant 0 : index
    %c0_4 = arith.constant 0 : index
    %7 = vector.load %arg4[%c0_3, %c0_4] : memref<1x128xf32, #tpu.memory_space<vmem>>, vector<1x128xf32>
    tpu.vector_store %arg4[%c0_3, %c0_4], %6 {strides = array<i32>} : memref<1x128xf32, #tpu.memory_space<vmem>>, vector<1x128xf32>,
    return
  }
  func.func @transform_0(%arg0: i32) -> i32 {
    %c0_i32 = arith.constant 0 : i32
    %c0_i32_0 = arith.constant 0 : i32
    return %c0_i32 : i32
  }
  func.func @transform_1(%arg0: i32) -> i32 {
    %c0_i32 = arith.constant 0 : i32
    %c0_i32_0 = arith.constant 0 : i32
    return %c0_i32 : i32
  }
  func.func @transform_2(%arg0: i32) -> (i32, i32) {
    %c0_i32 = arith.constant 0 : i32
    %c0_i32_0 = arith.constant 0 : i32
    return %arg0, %c0_i32 : i32, i32
  }
  func.func @transform_3(%arg0: i32) -> (i32, i32) {
    %c0_i32 = arith.constant 0 : i32
    %c0_i32_0 = arith.constant 0 : i32
    return %arg0, %c0_i32 : i32, i32
  }
}

</mosaic_0001>

<bundles_post_ra>
// kernel: linear_forward.1
= control target key start
LH: loop header
LB: loop body
LE: loop exit
PB: predicated region body
PF: predicated region fallthrough
CT: control target
= control target key end

     0   :  { %s60_s0 = inlined_call_operand.<no memory space> [shape: f32[1], index: 0, kind: input, shape index: {}]   ;;  %s61_s1 = inlined_call_operand.<no memory space> [shape: f32[1], index: 1, kind: input, shape index: {}]   ;;  %s62_s2 = inlined_call_operand.vmem [shape: f32[1,128], index: 2, kind: input, shape index: {}]   ;;  %s63_s3 = inlined_call_operand.vmem [shape: f32[1,128], index: 3, kind: output, shape index: {}]  }
   0x1   :  { %v16_v0 = vld [vmem:[%s62_s2] sm:$0x1]  ;;  %v18_v1 = vstv %s60_s0  ;;  %v21_v2 = vstv %s61_s1 }
   0x2   :  { %v19_v3 = vmul.f32 %v18_v1, %v16_v0 }
   0x4   :  { %v22_v4 = vadd.f32 %v21_v2, %v19_v3 }
   0x6   :  { %23 = vst [vmem:[%s63_s3] sm:$0x1] %v22_v4 }

</bundles_post_ra>
